<compile_context>
chip_gen: v6e
topology: v6e:2x2x1
jax: 0.10.0
libtpu: 0.0.40
codegen_flags: <defaults>
</compile_context>

<pallas_src>
import jax
import jax.numpy as jnp
from jax.experimental import pallas as pl
from jax.experimental.pallas import tpu as pltpu


def _lora_qkv_kernel(x_ref, w_ref, bias_ref, a_ref, b_ref, out_ref):
    """One row-tile step of the fused LoRA qkv projection.

    x_ref    : (tm, C)     bf16 token rows
    w_ref    : (C, 3C)     bf16 frozen qkv weight (fully resident, const index)
    bias_ref : (1, 3C)     f32 qkv bias
    a_ref    : (C, 2r)     bf16 [A_q | A_v]
    b_ref    : (2r, 3C)    bf16 zero-padded [B_q -> cols :C ; B_v -> cols 2C:]
    out_ref  : (tm, 3C)    output tile (out_dtype, default bf16)
    """
    x = x_ref[...]
    acc = jnp.dot(x, w_ref[...], preferred_element_type=jnp.float32)
    xa = jnp.dot(x, a_ref[...], preferred_element_type=jnp.float32)
    acc += jnp.dot(xa.astype(b_ref.dtype), b_ref[...],
                   preferred_element_type=jnp.float32)
    out_ref[...] = (acc + bias_ref[...]).astype(out_ref.dtype)


def prepare_lora_qkv_weights(w_qkv, b_qkv, a_q, b_q, a_v, b_v, *,
                             compute_dtype=jnp.bfloat16):
    """One-time (per init / per optimizer step) weight prep, hoisted out of the
    per-call wrapper so the forward path pays no cast/stack HBM traffic.

    Layouts (transposed vs. torch):
      w_qkv (C, 3C), b_qkv (3C,), a_* (C, r), b_* (r, C).
    """
    C, threeC = w_qkv.shape
    assert threeC == 3 * C
    r = a_q.shape[1]

    w = w_qkv.astype(compute_dtype)                                # (C, 3C)
    bias = b_qkv.reshape(1, threeC).astype(jnp.float32)            # (1, 3C)
    a_cat = jnp.concatenate([a_q, a_v], axis=1).astype(compute_dtype)  # (C, 2r)

    # Zero-padded B so (x @ A_cat) @ B_pad lands directly on the q / v columns:
    #   rows [:r]  -> columns [:C]   (q)
    #   rows [r:]  -> columns [2C:]  (v)
    b_pad = jnp.zeros((2 * r, threeC), dtype=jnp.float32)
    b_pad = b_pad.at[:r, :C].set(b_q.astype(jnp.float32))
    b_pad = b_pad.at[r:, 2 * C:].set(b_v.astype(jnp.float32))
    b_pad = b_pad.astype(compute_dtype)                            # (2r, 3C)

    return w, bias, a_cat, b_pad


def lora_qkv(x, w, bias, a_cat, b_pad, *, tile_m=512, out_dtype=None,
             compute_dtype=jnp.bfloat16):
    """x: (B, H, W, C) -> (B, H, W, 3C), matching _LoRA_qkv.forward.

    Takes weights prepared by prepare_lora_qkv_weights(). Output defaults to
    compute_dtype (bf16) — the values are computed through bf16 operands, so an
    f32 output would not add precision, only HBM traffic.
    """
    B, H, W, C = x.shape
    M = B * H * W
    threeC = w.shape[1]
    two_r = a_cat.shape[1]
    assert w.shape == (C, threeC) and threeC == 3 * C
    assert bias.shape == (1, threeC)
    assert b_pad.shape == (two_r, threeC)
    # All SAM variants (C = 768 / 1024 / 1280) are lane-aligned.
    assert C % 128 == 0, "embed dim must be a multiple of 128"

    if out_dtype is None:
        out_dtype = compute_dtype

    tm = min(tile_m, M)
    if tm != M:
        tm = max(8, (tm // 8) * 8)            # sublane-aligned row tiles
    n_row_tiles = pl.cdiv(M, tm)              # ragged last tile handled by Pallas

    # Ideally x already lives in bf16 between layers; this cast is a no-op then.
    x2d = x.reshape(M, C).astype(compute_dtype)

    itemsize = lambda a: jnp.dtype(a.dtype).itemsize
    cost = pl.CostEstimate(
        flops=2 * M * C * threeC + 2 * M * C * two_r + 2 * M * two_r * threeC,
        transcendentals=0,
        bytes_accessed=(x2d.size * itemsize(x2d) + w.size * itemsize(w)
                        + bias.size * itemsize(bias) + a_cat.size * itemsize(a_cat)
                        + b_pad.size * itemsize(b_pad)
                        + M * threeC * jnp.dtype(out_dtype).itemsize),
    )

    out2d = pl.pallas_call(
        _lora_qkv_kernel,
        out_shape=jax.ShapeDtypeStruct((M, threeC), out_dtype),
        grid_spec=pltpu.PrefetchScalarGridSpec(
            num_scalar_prefetch=0,
            grid=(n_row_tiles,),               # single row-tile axis; W resident
            in_specs=[
                pl.BlockSpec((tm, C), lambda i: (i, 0)),        # x row tile
                pl.BlockSpec((C, threeC), lambda i: (0, 0)),    # full W, resident
                pl.BlockSpec((1, threeC), lambda i: (0, 0)),    # bias
                pl.BlockSpec((C, two_r), lambda i: (0, 0)),     # [A_q | A_v]
                pl.BlockSpec((two_r, threeC), lambda i: (0, 0)),# padded B
            ],
            out_specs=pl.BlockSpec((tm, threeC), lambda i: (i, 0)),
        ),
        compiler_params=pltpu.CompilerParams(
            dimension_semantics=("parallel",),   # v7x megacore splits row tiles
            vmem_limit_bytes=48 << 20,           # above v5e 16MiB / v6e 32MiB
        ),                                       # defaults, below v7x 64MiB cap
        cost_estimate=cost,
    )(x2d, w, bias, a_cat, b_pad)

    return out2d.reshape(B, H, W, threeC)


def lora_qkv_reference(x, w_qkv, b_qkv, a_q, b_q, a_v, b_v):
    """Plain-JAX f32 reference mirroring the PyTorch _LoRA_qkv.forward."""
    qkv = jnp.einsum("bhwc,cd->bhwd", x, w_qkv) + b_qkv
    new_q = jnp.einsum("bhwc,cr,rd->bhwd", x, a_q, b_q)
    new_v = jnp.einsum("bhwc,cr,rd->bhwd", x, a_v, b_v)
    C = x.shape[-1]
    qkv = qkv.at[..., :C].add(new_q)
    qkv = qkv.at[..., -C:].add(new_v)
    return qkv


if __name__ == "__main__":
    # Small, SAM-like shapes: batch=2, 8x8 tokens, embed dim=128, LoRA rank=4.
    B, H, W, C, r = 2, 8, 8, 128, 4

    key = jax.random.PRNGKey(0)
    kx, kw, kb, kaq, kbq, kav, kbv = jax.random.split(key, 7)

    x = jax.random.normal(kx, (B, H, W, C), dtype=jnp.float32)

    # Frozen qkv linear: torch weight (3C, C), bias (3C,).  Stored transposed.
    w_qkv = jax.random.normal(kw, (C, 3 * C), dtype=jnp.float32) * 0.05
    b_qkv = jax.random.normal(kb, (3 * C,), dtype=jnp.float32) * 0.05

    # LoRA weights (B matrices kept nonzero so the LoRA path is exercised —
    # the module zero-inits them only at reset time).
    a_q = jax.random.normal(kaq, (C, r), dtype=jnp.float32) * 0.1
    b_q = jax.random.normal(kbq, (r, C), dtype=jnp.float32) * 0.1
    a_v = jax.random.normal(kav, (C, r), dtype=jnp.float32) * 0.1
    b_v = jax.random.normal(kbv, (r, C), dtype=jnp.float32) * 0.1

    # One-time weight prep (done at model init in a real deployment).
    w, bias, a_cat, b_pad = prepare_lora_qkv_weights(
        w_qkv, b_qkv, a_q, b_q, a_v, b_v)

    # tile_m=64 here just to exercise multiple row tiles at this tiny size.
    out = jax.block_until_ready(lora_qkv(x, w, bias, a_cat, b_pad, tile_m=64))
    ref = lora_qkv_reference(x, w_qkv, b_qkv, a_q, b_q, a_v, b_v)

    assert out.shape == (B, H, W, 3 * C)
    assert out.dtype == jnp.bfloat16
    # bf16 operands, bf16 output, f32 accumulation vs strict-f32 reference.
    assert jnp.allclose(out.astype(jnp.float32), ref, atol=5e-2, rtol=5e-2), \
        "mismatch vs reference"

    print("KERNEL_OK")
</pallas_src>

<mosaic_0001>
module attributes {stable_mosaic.version = 11 : i64} {
  func.func @_lora_qkv_kernel(%arg0: i32, %arg1: memref<64x128xbf16, #tpu.memory_space<vmem>>, %arg2: memref<128x384xbf16, #tpu.memory_space<vmem>>, %arg3: memref<1x384xf32, #tpu.memory_space<vmem>>, %arg4: memref<128x8xbf16, #tpu.memory_space<vmem>>, %arg5: memref<8x384xbf16, #tpu.memory_space<vmem>>, %arg6: memref<64x384xbf16, #tpu.memory_space<vmem>>) attributes {dimension_semantics = [#tpu.dimension_semantics<parallel>], iteration_bounds = array<i64: 2>, scalar_prefetch = 0 : i64, scratch_operands = 0 : i64, tpu.core_type = #tpu.core_type<tc>, window_params = [{transform_indices = @transform_0, window_bounds = array<i64: 64, 128>}, {pipeline_mode = #tpu.pipeline_mode<synchronous>, transform_indices = @transform_1, window_bounds = array<i64: 128, 384>}, {pipeline_mode = #tpu.pipeline_mode<synchronous>, transform_indices = @transform_2, window_bounds = array<i64: 1, 384>}, {pipeline_mode = #tpu.pipeline_mode<synchronous>, transform_indices = @transform_3, window_bounds = array<i64: 128, 8>}, {pipeline_mode = #tpu.pipeline_mode<synchronous>, transform_indices = @transform_4, window_bounds = array<i64: 8, 384>}, {transform_indices = @transform_5, window_bounds = array<i64: 64, 384>}]} {
    %c0 = arith.constant 0 : index
    %c0_0 = arith.constant 0 : index
    %0 = vector.load %arg1[%c0, %c0_0] : memref<64x128xbf16, #tpu.memory_space<vmem>>, vector<64x128xbf16>
    %c0_1 = arith.constant 0 : index
    %c0_2 = arith.constant 0 : index
    %1 = vector.load %arg2[%c0_1, %c0_2] : memref<128x384xbf16, #tpu.memory_space<vmem>>, vector<128x384xbf16>
    %cst = arith.constant dense<0.000000e+00> : vector<64x384xf32>
    %2 = tpu.matmul %0, %1, %cst {dimension_numbers = #tpu.dot_dimension_numbers<[1], [0], [0], [1], [0, 0, 1, 1], [], []>} : vector<64x128xbf16>, vector<128x384xbf16>, vector<64x384xf32> -> vector<64x384xf32>
    %c0_3 = arith.constant 0 : index
    %c0_4 = arith.constant 0 : index
    %3 = vector.load %arg4[%c0_3, %c0_4] : memref<128x8xbf16, #tpu.memory_space<vmem>>, vector<128x8xbf16>
    %cst_5 = arith.constant dense<0.000000e+00> : vector<64x8xf32>
    %4 = tpu.matmul %0, %3, %cst_5 {dimension_numbers = #tpu.dot_dimension_numbers<[1], [0], [0], [1], [0, 0, 1, 1], [], []>} : vector<64x128xbf16>, vector<128x8xbf16>, vector<64x8xf32> -> vector<64x8xf32>
    %5 = arith.truncf %4 : vector<64x8xf32> to vector<64x8xbf16>
    %c0_6 = arith.constant 0 : index
    %c0_7 = arith.constant 0 : index
    %6 = vector.load %arg5[%c0_6, %c0_7] : memref<8x384xbf16, #tpu.memory_space<vmem>>, vector<8x384xbf16>
    %cst_8 = arith.constant dense<0.000000e+00> : vector<64x384xf32>
    %7 = tpu.matmul %5, %6, %cst_8 {dimension_numbers = #tpu.dot_dimension_numbers<[1], [0], [0], [1], [0, 0, 1, 1], [], []>} : vector<64x8xbf16>, vector<8x384xbf16>, vector<64x384xf32> -> vector<64x384xf32>
    %8 = arith.addf %2, %7 : vector<64x384xf32>
    %c0_9 = arith.constant 0 : index
    %c0_10 = arith.constant 0 : index
    %9 = vector.load %arg3[%c0_9, %c0_10] : memref<1x384xf32, #tpu.memory_space<vmem>>, vector<1x384xf32>
    %10 = vector.broadcast %9 : vector<1x384xf32> to vector<64x384xf32>
    %11 = arith.addf %8, %10 : vector<64x384xf32>
    %12 = arith.truncf %11 : vector<64x384xf32> to vector<64x384xbf16>
    %c0_11 = arith.constant 0 : index
    %c0_12 = arith.constant 0 : index
    %13 = vector.load %arg6[%c0_11, %c0_12] : memref<64x384xbf16, #tpu.memory_space<vmem>>, vector<64x384xbf16>
    tpu.vector_store %arg6[%c0_11, %c0_12], %12 {strides = array<i32>} : memref<64x384xbf16, #tpu.memory_space<vmem>>, vector<64x384xbf16>,
    return
  }
  func.func @transform_0(%arg0: i32) -> (i32, i32) {
    %c0_i32 = arith.constant 0 : i32
    %c0_i32_0 = arith.constant 0 : i32
    return %arg0, %c0_i32 : i32, i32
  }
  func.func @transform_1(%arg0: i32) -> (i32, i32) {
    %c0_i32 = arith.constant 0 : i32
    %c0_i32_0 = arith.constant 0 : i32
    %c0_i32_1 = arith.constant 0 : i32
    return %c0_i32, %c0_i32_0 : i32, i32
  }
  func.func @transform_2(%arg0: i32) -> (i32, i32) {
    %c0_i32 = arith.constant 0 : i32
    %c0_i32_0 = arith.constant 0 : i32
    %c0_i32_1 = arith.constant 0 : i32
    return %c0_i32, %c0_i32_0 : i32, i32
  }
  func.func @transform_3(%arg0: i32) -> (i32, i32) {
    %c0_i32 = arith.constant 0 : i32
    %c0_i32_0 = arith.constant 0 : i32
    %c0_i32_1 = arith.constant 0 : i32
    return %c0_i32, %c0_i32_0 : i32, i32
  }
  func.func @transform_4(%arg0: i32) -> (i32, i32) {
    %c0_i32 = arith.constant 0 : i32
    %c0_i32_0 = arith.constant 0 : i32
    %c0_i32_1 = arith.constant 0 : i32
    return %c0_i32, %c0_i32_0 : i32, i32
  }
  func.func @transform_5(%arg0: i32) -> (i32, i32) {
    %c0_i32 = arith.constant 0 : i32
    %c0_i32_0 = arith.constant 0 : i32
    return %arg0, %c0_i32 : i32, i32
  }
}

</mosaic_0001>

<bundles_post_ra>
// kernel: tpu_custom_call.1
= control target key start
LH: loop header
LB: loop body
LE: loop exit
PB: predicated region body
PF: predicated region fallthrough
CT: control target
= control target key end

     0   :  { %10 = vsyncpa [#allocation3], 0  ;;  %s1838_s0 = inlined_call_operand.vmem [shape: bf16[128,128], index: 0, kind: input, shape index: {}]   ;;  %s1839_s1 = inlined_call_operand.hbm [shape: bf16[128,384], index: 1, kind: input, shape index: {}]   ;;  %s1840_s2 = inlined_call_operand.vmem [shape: f32[1,384], index: 2, kind: input, shape index: {}]   ;;  %s1841_s3 = inlined_call_operand.vmem [shape: bf16[128,8], index: 3, kind: input, shape index: {}]   ;;  %s1842_s4 = inlined_call_operand.hbm [shape: bf16[8,384], index: 4, kind: input, shape index: {}]   ;;  %s1843_s5 = inlined_call_operand.hbm [shape: bf16[128,384], index: 5, kind: output, shape index: {}]  }
   0x1   :  { %11 = vsyncpa [#allocation6], 0 }
   0x2   :  { %12 = vsyncpa [#allocation4], 0 }
   0x3   :  { %14 = vsyncpa [#allocation4 + $0x1], 0  ;;  %s1582_s18 = smov 0   ;;  %s1584_s19 = smov 0  }
   0x4   :  { %s1586_s20 = smov 0   ;;  %s1588_s21 = smov 0  }
   0x5 LB: > { %s1603_s22 = sadd.s32 4294967295, %s1542_s21   ;;  %s1125_s23 = sadd.s32 4294967294, %s1542_s21   ;;  %s1542_s21 = sphi %s1588_s21, %s1857_s21   ;;  %s1538_s20 = sphi %s1586_s20, %s1856_s20   ;;  %s1534_s19 = sphi %s1584_s19, %s1855_s19   ;;  %s1530_s18 = sphi %s1582_s18, %s1854_s18  }
   0x6   : > { %s1607_s24 = sadd.s32 1, %s1542_s21   ;;  %s137_s25 = sadd.s32 1, %s1538_s20 }
   0x7   : > { %s134_s26 = ssub.s32 %s1542_s21, %s1607_s24  ;;  %p147_p0 = scmp.ne.s32.totalorder %s1538_s20, %s1534_s19 }
   0x8   : > { %p135_p1 = scmp.eq.s32.totalorder %s134_s26, 0  ;;  %p148_p2 = scmp.eq.s32.totalorder %s1603_s22, 1 }
   0x9   : > { %p153_p3 = scmp.ne.s32.totalorder %s1534_s19, %s1530_s18  ;;  %p154_p4 = scmp.eq.s32.totalorder %s1125_s23, 1 }
   0xa   : > { %s1618_s27 = scalar_select %p135_p1, %s1538_s20, %s137_s25  }
   0xb   : > { %p1620_p5 = por %p148_p2, %p147_p0  ;;  %p1624_p6 = por %p154_p4, %p153_p3 }
   0xc   : > { %p1126_p7 = scmp.ge.s32.totalorder %s1542_s21, 1  ;;  %p161_p8 = scmp.lt.s32.totalorder %s1542_s21, 3 }
   0xd   : > { %s1846_s29 = scalar_select %p1624_p6, 1, 0 }
   0xe   : > { %p1844_p9 = scmp.eq.s32.totalorder %s1603_s22, 0  ;;  %p1631_p10 = pnand %p1126_p7, %p161_p8 }
   0xf   : > { %s1544_s6 = smov [#allocation2]   ;;  %s1545_s9 = smov [#allocation5]  }
  0x10   : > { %s173_s7 = sshll.u32 %s1544_s6, 4  ;;  %p1320_p11 = pneg %p1631_p10  ;;  %s174_s7 = int_to_ptr.vmem [resolvable:$true] %s173_s7 }
  0x11   : > { %s193_s10 = sshll.u32 %s1545_s9, 4  ;;  %s1433_s11 = scalar_lea.vmem %s174_s7, 3072  ;;  %s194_s10 = int_to_ptr.vmem [resolvable:$true] %s193_s10 }
  0x12   : > { %p1639_p12 = pnand %p1844_p9, %p1320_p11  ;;  %p1434_p0 = scmp.ne.s32.totalorder %s174_s7, %s1433_s11 }
  0x13   : > { %p1441_p3 = scmp.lt.s32.totalorder %s174_s7, %s174_s7  ;;  %p1442_p4 = scmp.lt.s32.totalorder %s1433_s11, %s1433_s11 }
  0x14   : > { %p1424_p13 = pneg %p1639_p12 }
  0x15   : > { %p1443_p7 = por %p1442_p4, %p1441_p3 }
  0x16   : > { %p1436_p1 = pnand %p1434_p0, %p1424_p13 }
  0x18   : > { %p1437_p2 = pneg %p1436_p1 }
  0x1a   : > { %p1444_p8 = pnand %p1443_p7, %p1437_p2 }
  0x1c   : > { %1447 = shalt.err (!%p1444_p8)
}
  0x1d   : > { %s1546_s12 = smov 192   ;;  %s1547_s13 = smov 12  }
  0x1e   : > { %1323 = dma.hbm_to_vmem [thread:$0]  (!%p1639_p12), %s1839_s1, 3072, %s174_s7, [#allocation3], %s1546_s12, %s1546_s12, %s1547_s13  }
  0x1f   : > { %s1459_s16 = scalar_lea.vmem %s194_s10, 192  ;;  %p1467_p9 = scmp.lt.s32.totalorder %s194_s10, %s194_s10 }
  0x20   : > { %p1460_p11 = scmp.ne.s32.totalorder %s194_s10, %s1459_s16  ;;  %p1468_p6 = scmp.lt.s32.totalorder %s1459_s16, %s1459_s16 }
  0x22   : > { %p1462_p0 = pnand %p1460_p11, %p1424_p13  ;;  %p1469_p3 = por %p1468_p6, %p1467_p9 }
  0x24   : > { %p1463_p1 = pneg %p1462_p0 }
  0x26   : > { %p1470_p2 = pnand %p1469_p3, %p1463_p1 }
  0x28   : > { %1473 = shalt.err (!%p1470_p2)
}
  0x29   : > { %1326 = dma.hbm_to_vmem [thread:$0]  (!%p1639_p12), %s1842_s4, 192, %s194_s10, [#allocation6]  }
  0x2a   : > { %215 = sbr.rel (%p1631_p10) target bundleno = 576 (0x240), region = 40  ;;  %p1849_p4 = scmp.eq.s32.totalorder (!%p1631_p10), %s1603_s22, 0 }
  0x2f   : > { %1517 = dma.done.wait (%p1849_p4), [#allocation3], 3072   ;;  %p1850_p13 = pmov %p1849_p4 }
  0x30   : > { %p1851_p7 = pmov %p1849_p4 }
  0x31   : > { %1519 = vsyncadd (%p1850_p13), [#allocation3], 4294964224 }
  0x32   : > { %1521 = dma.done.wait (%p1851_p7), [#allocation6], 192   ;;  %p1852_p6 = pmov %p1849_p4 }
  0x33   : > { %s1133_s25 = sshll.u32 %s1603_s22, 3  ;;  %v1375_v0 = vld [vmem:[%s1841_s3 + $0x38] sm:$0xff]   ;;  %v1376_v1 = vld [vmem:[%s1841_s3 + $0x30] sm:$0xff]   ;;  %v1377_v2 = vld [vmem:[%s1841_s3 + $0x28] sm:$0xff]   ;;  %vm475_vm0 = vcmask 1043456   ;;  %v1548_v33 = vmov 0   ;;  %v891_v61 = vlaneseq }
  0x34   : > { %1523 = vsyncadd (%p1852_p6), [#allocation6], 4294967104  ;;  %p248_p9 = scmp.lt.s32.totalorder %s1133_s25, 15  ;;  %1249 = vmatprep.subr.bf16.mxu0 %v1375_v0  ;;  %v1378_v3 = vld [vmem:[%s1841_s3 + $0x20] sm:$0xff]   ;;  %v1379_v5 = vld [vmem:[%s1841_s3 + $0x18] sm:$0xff]   ;;  %517 = vmatprep.mubr.bf16.mxu1 %v1548_v33  ;;  %vm462_vm1 = vcmask 64512  }
  0x35   : > { %1250 = vmatpush3.bf16.msra.mxu0 %v1375_v0  ;;  %v1380_v6 = vld [vmem:[%s1841_s3 + $0x10] sm:$0xff]   ;;  %v1381_v7 = vld [vmem:[%s1841_s3 + $0x8] sm:$0xff]   ;;  %v1382_v8 = vld [vmem:[%s1841_s3] sm:$0xff]   ;;  %v1733_v63 = vshrl.u32 %v891_v61, 7  ;;  %s244_s10 = sand.u32 1, %s1534_s19  }
  0x36   : > { %s1859_s25 = smov (!%p248_p9, %s1133_s25), 15  ;;  %1251 = vmatprep.subr.bf16.mxu0 %v1376_v1  ;;  %v1389_v9 = vld [vmem:[#allocation2 + $0xac] ss:$12 sps:$4 sm:$0xff]   ;;  %v1387_v12 = vld [vmem:[#allocation2 + $0xa8] ss:$12 sps:$4 sm:$0xff]   ;;  %v452_v26 = vld [vmem:[#allocation5] sm:$0xff] }
  0x37   : > { %s1134_s8 = sshll.u32 %s1859_s25, 2  ;;  %v1392_v13 = vld [vmem:[#allocation2 + $0x94] ss:$12 sps:$4 sm:$0xff]   ;;  %v1390_v14 = vld [vmem:[#allocation2 + $0x90] ss:$12 sps:$4 sm:$0xff]   ;;  %v1148_v27 = vcombine.high %v452_v26, %v452_v26  ;;  %v1147_v28 = vcombine.low %v452_v26, %v452_v26  ;;  %s1308_s11 = smul.u32 96, %s244_s10 }
  0x38   : > { %s1684_s13 = scalar_lea.vmem %s1838_s0, %s1134_s8  ;;  %v1395_v15 = vld [vmem:[#allocation2 + $0x7c] ss:$12 sps:$4 sm:$0xff]   ;;  %v1393_v17 = vld [vmem:[#allocation2 + $0x78] ss:$12 sps:$4 sm:$0xff]   ;;  %v1396_v19 = vld [vmem:[#allocation2 + $0x60] ss:$12 sps:$4 sm:$0xff]  }
  0x39   : > { %1252 = vmatpush3.bf16.msra.mxu0 %v1376_v1  ;;  %v1690_v4 = vld [vmem:[%s1684_s13] sm:$0xff]   ;;  %v1706_v10 = vld [vmem:[%s1684_s13 + $0x8] sm:$0xff]   ;;  %v1709_v11 = vld [vmem:[%s1684_s13 + $0x10] sm:$0xff]   ;;  %1150 = vmatprep.subr.msk.bf16.mxu1 %vm475_vm0, %v1148_v27  ;;  %v477_v31 = vsel %vm475_vm0, %v1147_v28, 0  ;;  %v893_v1 = vsub.s32 0, %v1733_v63  ;;  %s1753_s12 = scalar_lea.vmem [#allocation7], %s1308_s11 }
  0x3a   : > { %1253 = vmatprep.subr.bf16.mxu0 %v1377_v2  ;;  %1265 = vmatprep.mubr.bf16.mxu0 %v1690_v4  ;;  %v1714_v16 = vld [vmem:[%s1684_s13 + $0x18] sm:$0xff]   ;;  %v1398_v18 = vld [vmem:[#allocation2 + $0x64] ss:$12 sps:$4 sm:$0xff]   ;;  %v1399_v21 = vld [vmem:[#allocation2 + $0x48] ss:$12 sps:$4 sm:$0xff]   ;;  %s1309_s13 = smul.u32 1536, %s1603_s22 }
  0x3b   : > { %v1401_v20 = vld [vmem:[#allocation2 + $0x4c] ss:$12 sps:$4 sm:$0xff]   ;;  %v1404_v22 = vld [vmem:[#allocation2 + $0x34] ss:$12 sps:$4 sm:$0xff]   ;;  %v1402_v23 = vld [vmem:[#allocation2 + $0x30] ss:$12 sps:$4 sm:$0xff]   ;;  %500 = vmatpush1.bf16.msra.mxu1 %v477_v31 }
  0x3c   : > { %v1407_v24 = vld [vmem:[#allocation2 + $0x1c] ss:$12 sps:$4 sm:$0xff]   ;;  %v1405_v25 = vld [vmem:[#allocation2 + $0x18] ss:$12 sps:$4 sm:$0xff]   ;;  %v1410_v30 = vld [vmem:[#allocation2] ss:$12 sps:$4 sm:$0xff]   ;;  %s1790_s17 = scalar_lea.hbm %s1843_s5, %s1309_s13 }
  0x3d   : > { %1254 = vmatpush3.bf16.msra.mxu0 %v1377_v2  ;;  %v1412_v29 = vld [vmem:[#allocation2 + $0x4] ss:$12 sps:$4 sm:$0xff]   ;;  %v1413_v32 = vld [vmem:[#allocation5 + $0x8] ss:$0 sps:$4 sm:$0xff]   ;;  %v1416_v49 = vld [vmem:[#allocation2 + $0x80] ss:$12 sps:$4 sm:$0xff]  }
  0x3e   : > { %1255 = vmatprep.subr.bf16.mxu0 %v1378_v3  ;;  %1307 = vmatprep.subr.msk.bf16.mxu1 %vm475_vm0, %v1413_v32  ;;  %v483_v34 = vsel %vm475_vm0, %v1413_v32, 0  ;;  %v1414_v40 = vld [vmem:[#allocation2 + $0xb0] ss:$12 sps:$4 sm:$0xff]   ;;  %v1415_v48 = vld [vmem:[#allocation2 + $0x98] ss:$12 sps:$4 sm:$0xff]   ;;  %v897_v2 = vsub.s32 1, %v1733_v63 }
  0x3f   : > { %v1417_v50 = vld [vmem:[#allocation2 + $0x68] ss:$12 sps:$4 sm:$0xff]   ;;  %v1418_v51 = vld [vmem:[#allocation2 + $0x50] ss:$12 sps:$4 sm:$0xff]   ;;  %v1419_v52 = vld [vmem:[#allocation2 + $0x38] ss:$12 sps:$4 sm:$0xff]  }
  0x40   : > { %v1420_v53 = vld [vmem:[#allocation2 + $0x20] ss:$12 sps:$4 sm:$0xff]   ;;  %v1421_v54 = vld [vmem:[#allocation2 + $0x8] ss:$12 sps:$4 sm:$0xff]   ;;  %s1041_s14 = sshll.u32 %s1753_s12, 4  ;;  %s1798_s22 = scalar_lea.sflag [#allocation4], %s244_s10  ;;  %s1792_s14 = int_to_ptr.vmem [resolvable:$true] %s1041_s14 }
  0x41   : > { %1256 = vmatpush3.bf16.msra.mxu0 %v1378_v3  ;;  %v1740_v3 = vld [vmem:[%s1840_s2] sm:$0x7]  ;;  %s1474_s23 = scalar_lea.vmem %s1792_s14, 1536  ;;  %s1549_s25 = smov [#allocation7]  }
  0x42   : > { %1257 = vmatprep.subr.bf16.mxu0 %v1379_v5  ;;  %p1475_p10 = scmp.ne.s32.totalorder %s1792_s14, %s1474_s23  ;;  %s1478_s26 = sshll.u32 %s1549_s25, 4  ;;  %s1479_s26 = int_to_ptr.vmem [resolvable:$false] %s1478_s26 }
  0x43   : > { %s1480_s6 = scalar_lea.vmem %s1479_s26, 3072  ;;  %p1481_p11 = scmp.lt.s32.totalorder %s1792_s14, %s1479_s26 }
  0x44   : > { %p1476_p12 = pnand %p1475_p10, %p1620_p5  ;;  %p1482_p0 = scmp.lt.s32.totalorder %s1480_s6, %s1474_s23 }
  0x45   : > { %1258 = vmatpush3.bf16.msra.mxu0 %v1379_v5 }
  0x46   : > { %1259 = vmatprep.subr.bf16.mxu0 %v1380_v6  ;;  %p1477_p8 = pneg %p1476_p12  ;;  %p1483_p1 = por %p1482_p0, %p1481_p11 }
  0x48   : > { %p1484_p3 = pnand %p1483_p1, %p1477_p8 }
  0x49   : > { %1260 = vmatpush3.bf16.msra.mxu0 %v1380_v6 }
  0x4a   : > { %1261 = vmatprep.subr.bf16.mxu0 %v1381_v7 }
  0x4d   : > { %1262 = vmatpush3.bf16.msra.mxu0 %v1381_v7  ;;  %v1744_v7 = vrot.slane %v1740_v3, %v893_v1 }
  0x4e   : > { %1263 = vmatprep.subr.bf16.mxu0 %v1382_v8 }
  0x51   : > { %1264 = vmatpush3.bf16.msra.mxu0 %v1382_v8  ;;  %v1747_v8 = vrot.slane %v1740_v3, %v897_v2 }
  0x52   : > { %751 = vmatprep.subr.bf16.mxu0 %v1389_v9 }
  0x54   : > { %1266 = vmatmul.mubr.bf16.vlgmr.msra.gmra.mxu0 %v1706_v10 }
  0x55   : > { %1269 = vmatprep.mubr.bf16.mxu0 %v1709_v11  ;;  %752 = vmatpush1.bf16.msra.mxu0 %v1387_v12 }
  0x56   : > { %753 = vmatprep.subr.bf16.mxu0 %v1392_v13 }
  0x59   : > { %754 = vmatpush1.bf16.msra.mxu0 %v1390_v14 }
  0x5a   : > { %755 = vmatprep.subr.bf16.mxu0 %v1395_v15 }
  0x5c   : > { %1270 = vmatmul.mubr.bf16.gmra.mxu0 %v1714_v16 }
  0x5d   : > { %756 = vmatpush1.bf16.msra.mxu0 %v1393_v17  ;;  %783 = vmatprep.mubr.bf16.mxu0 %v1548_v33 }
  0x5e   : > { %757 = vmatprep.subr.bf16.mxu0 %v1398_v18 }
  0x61   : > { %758 = vmatpush1.bf16.msra.mxu0 %v1396_v19 }
  0x62   : > { %759 = vmatprep.subr.bf16.mxu0 %v1401_v20 }
  0x65   : > { %760 = vmatpush1.bf16.msra.mxu0 %v1399_v21 }
  0x66   : > { %761 = vmatprep.subr.bf16.mxu0 %v1404_v22 }
  0x69   : > { %762 = vmatpush1.bf16.msra.mxu0 %v1402_v23 }
  0x6a   : > { %763 = vmatprep.subr.bf16.mxu0 %v1407_v24 }
  0x6d   : > { %764 = vmatpush1.bf16.msra.mxu0 %v1405_v25 }
  0x6e   : > { %765 = vmatprep.subr.bf16.mxu0 %v1412_v29 }
  0x71   : > { %766 = vmatpush1.bf16.msra.mxu0 %v1410_v30 }
  0x74   : > { %784 = vmatmul.mubr.bf16.vlgmr.msra.gmra.mxu0 %v1690_v4 }
  0x75   : > { %793 = vmatprep.mubr.bf16.mxu0 %v1548_v33 }
  0x7c   : > { %794 = vmatmul.mubr.bf16.gmra.mxu0 %v1706_v10 }
  0x7d   : > { %803 = vmatprep.mubr.bf16.mxu0 %v1548_v33 }
  0x84   : > { %804 = vmatmul.mubr.bf16.gmra.mxu0 %v1709_v11 }
  0x85   : > { %813 = vmatprep.mubr.bf16.mxu0 %v1548_v33 }
  0x8c   : > { %814 = vmatmul.mubr.bf16.gmra.mxu0 %v1714_v16 }
 0x114   : > { %v1267_v35 = vpop.f32.mrf.mxu0 }
 0x116   : > { %v417_v36 = vpop.f32.mrf.mxu0 }
 0x118   : > { %v1268_v37 = vpop.f32.mrf.mxu0 }
 0x119   : > { %v449_v43 = vpack.c.bf16 %v1268_v37, %v1267_v35 }
 0x11a   : > { %v420_v38 = vpop.f32.mrf.mxu0 }
 0x11b   : > { %v448_v39 = vpack.c.bf16 %v420_v38, %v417_v36 }
 0x11c   : > { %v1271_v41 = vpop.f32.mrf.mxu0 }
 0x11d   : > { %1151 = vmatmul.mubr.msk.bf16.vlgmr.msra.gmra.mxu1 %vm462_vm1, %v448_v39 }
 0x11e   : > { %1274 = vmatpush3.bf16.msra.mxu1 %v483_v34  ;;  %527 = vmatprep.mubr.bf16.mxu1 %v1548_v33  ;;  %v433_v42 = vpop.f32.mrf.mxu0 }
 0x11f   : > { %1283 = vmatprep.subr.bf16.mxu1 %v1414_v40 }
 0x120   : > { %v1272_v44 = vpop.f32.mrf.mxu0 }
 0x121   : > { %v451_v47 = vpack.c.bf16 %v1272_v44, %v1271_v41 }
 0x122   : > { %v436_v45 = vpop.f32.mrf.mxu0 }
 0x123   : > { %v450_v46 = vpack.c.bf16 %v436_v45, %v433_v42 }
 0x125   : > { %1152 = vmatmul.mubr.msk.bf16.gmra.mxu1 %vm462_vm1, %v449_v43 }
 0x126   : > { %537 = vmatprep.mubr.bf16.mxu1 %v1548_v33 }
 0x12d   : > { %1153 = vmatmul.mubr.msk.bf16.gmra.mxu1 %vm462_vm1, %v450_v46 }
 0x12e   : > { %547 = vmatprep.mubr.bf16.mxu1 %v1548_v33 }
 0x134   : > { %v785_v55 = vpop.f32.mrf.mxu0 }
 0x135   : > { %1154 = vmatmul.mubr.msk.bf16.gmra.mxu1 %vm462_vm1, %v451_v47 }
 0x136   : > { %1275 = vmatprep.mubr.msk.bf16.mxu1 %vm462_vm1, %v448_v39  ;;  %v787_v56 = vpop.f32.mrf.mxu0 }
 0x138   : > { %v789_v57 = vpop.f32.mrf.mxu0 }
 0x13a   : > { %v791_v58 = vpop.f32.mrf.mxu0 }
 0x13c   : > { %v795_v59 = vpop.f32.mrf.mxu0 }
 0x13d   : > { %1276 = vmatmul.mubr.msk.bf16.vlgmr.msra.gmra.mxu1 %vm462_vm1, %v449_v43 }
 0x13e   : > { %1284 = vmatpush3.bf16.msra.mxu1 %v1414_v40  ;;  %1279 = vmatprep.mubr.msk.bf16.mxu1 %vm462_vm1, %v450_v46  ;;  %v797_v60 = vpop.f32.mrf.mxu0 }
 0x13f   : > { %1285 = vmatprep.subr.bf16.mxu1 %v1415_v48 }
 0x140   : > { %v799_v62 = vpop.f32.mrf.mxu0 }
 0x142   : > { %1286 = vmatpush3.bf16.msra.mxu1 %v1415_v48  ;;  %v801_v0 = vpop.f32.mrf.mxu0 }
 0x143   : > { %1287 = vmatprep.subr.bf16.mxu1 %v1416_v49 }
 0x144   : > { %v805_v5 = vpop.f32.mrf.mxu0 }
 0x145   : > { %1280 = vmatmul.mubr.msk.bf16.gmra.mxu1 %vm462_vm1, %v451_v47 }
 0x146   : > { %1288 = vmatpush3.bf16.msra.mxu1 %v1416_v49  ;;  %1299 = vmatprep.mubr.bf16.mxu1 %v1690_v4  ;;  %v807_v12 = vpop.f32.mrf.mxu0 }
 0x147   : > { %1289 = vmatprep.subr.bf16.mxu1 %v1417_v50 }
 0x148   : > { %v809_v20 = vpop.f32.mrf.mxu0 }
 0x14a   : > { %1290 = vmatpush3.bf16.msra.mxu1 %v1417_v50  ;;  %v811_v28 = vpop.f32.mrf.mxu0 }
 0x14b   : > { %1291 = vmatprep.subr.bf16.mxu1 %v1418_v51 }
 0x14c   : > { %v815_v36 = vpop.f32.mrf.mxu0 }
 0x14e   : > { %1292 = vmatpush3.bf16.msra.mxu1 %v1418_v51  ;;  %v817_v44 = vpop.f32.mrf.mxu0 }
 0x14f   : > { %1293 = vmatprep.subr.bf16.mxu1 %v1419_v52 }
 0x152   : > { %1294 = vmatpush3.bf16.msra.mxu1 %v1419_v52  ;;  %v819_v52 = vpop.f32.mrf.mxu0 }
 0x153   : > { %1295 = vmatprep.subr.bf16.mxu1 %v1420_v53 }
 0x156   : > { %1296 = vmatpush3.bf16.msra.mxu1 %v1420_v53 }
 0x157   : > { %1297 = vmatprep.subr.bf16.mxu1 %v1421_v54 }
 0x15a   : > { %1298 = vmatpush3.bf16.msra.mxu1 %v1421_v54 }
 0x15d   : > { %1300 = vmatmul.mubr.bf16.vlgmr.msra.gmra.mxu1 %v1706_v10 }
 0x15e   : > { %1303 = vmatprep.mubr.bf16.mxu1 %v1709_v11 }
 0x165   : > { %1304 = vmatmul.mubr.bf16.gmra.mxu1 %v1714_v16 }
 0x1dd   : > { %v519_v4 = vpop.f32.mrf.mxu1 }
 0x1de   : > { %v786_v6 = vadd.f32 %v785_v55, %v519_v4 }
 0x1df   : > { %v521_v9 = vpop.f32.mrf.mxu1 }
 0x1e0   : > { %v788_v10 = vadd.f32 %v787_v56, %v521_v9  ;;  %v906_v13 = vadd.f32 %v1744_v7, %v786_v6 }
 0x1e1   : > { %v523_v11 = vpop.f32.mrf.mxu1 }
 0x1e2   : > { %v907_v14 = vadd.f32 %v1747_v8, %v788_v10  ;;  %v790_v15 = vadd.f32 %v789_v57, %v523_v11 }
 0x1e3   : > { %v525_v16 = vpop.f32.mrf.mxu1 }
 0x1e4   : > { %v1204_v17 = vpack.c.bf16 %v907_v14, %v906_v13  ;;  %v792_v18 = vadd.f32 %v791_v58, %v525_v16  ;;  %v909_v21 = vadd.f32 %v1744_v7, %v790_v15 }
 0x1e5   : > { %v529_v19 = vpop.f32.mrf.mxu1 }
 0x1e6   : > { %1010 = vst [vmem:[%s1753_s12] sm:$0xff] %v1204_v17  ;;  %v910_v22 = vadd.f32 %v1747_v8, %v792_v18  ;;  %v796_v23 = vadd.f32 %v795_v59, %v529_v19  ;;  %v901_v17 = vsub.s32 2, %v1733_v63 }
 0x1e7   : > { %v531_v24 = vpop.f32.mrf.mxu1 }
 0x1e8   : > { %v1206_v25 = vpack.c.bf16 %v910_v22, %v909_v21  ;;  %v798_v26 = vadd.f32 %v797_v60, %v531_v24  ;;  %v912_v29 = vadd.f32 %v1744_v7, %v796_v23  ;;  %v821_v60 = vpop.f32.mrf.mxu0  ;;  %v902_v19 = vrot.slane %v1740_v3, %v901_v17 }
 0x1e9   : > { %v533_v27 = vpop.f32.mrf.mxu1 }
 0x1ea   : > { %1012 = vst [vmem:[%s1753_s12 + $0xc] sm:$0xff] %v1206_v25  ;;  %v913_v30 = vadd.f32 %v1747_v8, %v798_v26  ;;  %v800_v31 = vadd.f32 %v799_v62, %v533_v27 }
 0x1eb   : > { %v535_v32 = vpop.f32.mrf.mxu1 }
 0x1ec   : > { %v1208_v33 = vpack.c.bf16 %v913_v30, %v912_v29  ;;  %v802_v34 = vadd.f32 %v801_v0, %v535_v32  ;;  %v915_v37 = vadd.f32 %v1744_v7, %v800_v31 }
 0x1ed   : > { %v539_v35 = vpop.f32.mrf.mxu1 }
 0x1ee   : > { %1014 = vst [vmem:[%s1753_s12 + $0x18] sm:$0xff] %v1208_v33  ;;  %v916_v38 = vadd.f32 %v1747_v8, %v802_v34  ;;  %v806_v39 = vadd.f32 %v805_v5, %v539_v35 }
 0x1ef   : > { %v541_v40 = vpop.f32.mrf.mxu1 }
 0x1f0   : > { %v1210_v41 = vpack.c.bf16 %v916_v38, %v915_v37  ;;  %v808_v42 = vadd.f32 %v807_v12, %v541_v40  ;;  %v918_v45 = vadd.f32 %v1744_v7, %v806_v39 }
 0x1f1   : > { %v543_v43 = vpop.f32.mrf.mxu1 }
 0x1f2   : > { %1016 = vst [vmem:[%s1753_s12 + $0x24] sm:$0xff] %v1210_v41  ;;  %v919_v46 = vadd.f32 %v1747_v8, %v808_v42  ;;  %v810_v47 = vadd.f32 %v809_v20, %v543_v43 }
 0x1f3   : > { %v545_v48 = vpop.f32.mrf.mxu1 }
 0x1f4   : > { %v1212_v49 = vpack.c.bf16 %v919_v46, %v918_v45  ;;  %v812_v50 = vadd.f32 %v811_v28, %v545_v48  ;;  %v921_v53 = vadd.f32 %v1744_v7, %v810_v47 }
 0x1f5   : > { %v549_v51 = vpop.f32.mrf.mxu1 }
 0x1f6   : > { %1018 = vst [vmem:[%s1753_s12 + $0x30] sm:$0xff] %v1212_v49  ;;  %v922_v54 = vadd.f32 %v1747_v8, %v812_v50  ;;  %v816_v55 = vadd.f32 %v815_v36, %v549_v51 }
 0x1f7   : > { %v551_v56 = vpop.f32.mrf.mxu1 }
 0x1f8   : > { %v1214_v57 = vpack.c.bf16 %v922_v54, %v921_v53  ;;  %v818_v58 = vadd.f32 %v817_v44, %v551_v56  ;;  %v924_v61 = vadd.f32 %v1744_v7, %v816_v55 }
 0x1f9   : > { %v553_v59 = vpop.f32.mrf.mxu1 }
 0x1fa   : > { %1020 = vst [vmem:[%s1753_s12 + $0x3c] sm:$0xff] %v1214_v57  ;;  %v925_v62 = vadd.f32 %v1747_v8, %v818_v58  ;;  %v820_v0 = vadd.f32 %v819_v52, %v553_v59 }
 0x1fb   : > { %v555_v1 = vpop.f32.mrf.mxu1 }
 0x1fc   : > { %v1216_v2 = vpack.c.bf16 %v925_v62, %v924_v61  ;;  %v822_v4 = vadd.f32 %v821_v60, %v555_v1  ;;  %v927_v5 = vadd.f32 %v1744_v7, %v820_v0 }
 0x1fd   : > { %v1277_v9 = vpop.f32.mrf.mxu1 }
 0x1fe   : > { %1022 = vst [vmem:[%s1753_s12 + $0x48] sm:$0xff] %v1216_v2  ;;  %v928_v6 = vadd.f32 %v1747_v8, %v822_v4 }
 0x1ff   : > { %v592_v11 = vpop.f32.mrf.mxu1 }
 0x200   : > { %v1218_v10 = vpack.c.bf16 %v928_v6, %v927_v5 }
 0x201   : > { %v1278_v12 = vpop.f32.mrf.mxu1 }
 0x202   : > { %1024 = vst [vmem:[%s1753_s12 + $0x54] sm:$0xff] %v1218_v10 }
 0x203   : > { %v595_v13 = vpop.f32.mrf.mxu1 }
 0x205   : > { %v1281_v14 = vpop.f32.mrf.mxu1 }
 0x207   : > { %v608_v15 = vpop.f32.mrf.mxu1 }
 0x209   : > { %v1282_v16 = vpop.f32.mrf.mxu1 }
 0x20b   : > { %v611_v18 = vpop.f32.mrf.mxu1 }
 0x21d   : > { %v1301_v20 = vpop.f32.mrf.mxu1 }
 0x21e   : > { %v867_v7 = vadd.f32 %v1301_v20, %v1277_v9 }
 0x21f   : > { %v858_v21 = vpop.f32.mrf.mxu1 }
 0x220   : > { %v914_v8 = vadd.f32 %v902_v19, %v867_v7  ;;  %v859_v22 = vadd.f32 %v858_v21, %v592_v11 }
 0x221   : > { %v1302_v23 = vpop.f32.mrf.mxu1 }
 0x222   : > { %v1209_v24 = vpack.c.bf16 %v914_v8, %v914_v8  ;;  %v908_v25 = vadd.f32 %v902_v19, %v859_v22  ;;  %v870_v26 = vadd.f32 %v1302_v23, %v1278_v12 }
 0x223   : > { %v861_v27 = vpop.f32.mrf.mxu1 }
 0x224   : > { %1015 = vst [vmem:[%s1753_s12 + $0x20] sm:$0xf] %v1209_v24  ;;  %v1205_v28 = vpack.c.bf16 %v908_v25, %v908_v25  ;;  %v917_v29 = vadd.f32 %v902_v19, %v870_v26  ;;  %v862_v63 = vadd.f32 %v861_v27, %v595_v13 }
 0x225   : > { %v1305_v30 = vpop.f32.mrf.mxu1 }
 0x226   : > { %1011 = vst [vmem:[%s1753_s12 + $0x8] sm:$0xf] %v1205_v28  ;;  %v1211_v3 = vpack.c.bf16 %v917_v29, %v917_v29  ;;  %v911_v31 = vadd.f32 %v902_v19, %v862_v63  ;;  %v883_v32 = vadd.f32 %v1305_v30, %v1281_v14 }
 0x227   : > { %v874_v33 = vpop.f32.mrf.mxu1 }
 0x228   : > { %1017 = vst [vmem:[%s1753_s12 + $0x2c] sm:$0xf] %v1211_v3  ;;  %v1207_v34 = vpack.c.bf16 %v911_v31, %v911_v31  ;;  %v926_v35 = vadd.f32 %v902_v19, %v883_v32  ;;  %v875_v36 = vadd.f32 %v874_v33, %v608_v15 }
 0x229   : > { %v1306_v37 = vpop.f32.mrf.mxu1 }
 0x22a   : > { %1013 = vst [vmem:[%s1753_s12 + $0x14] sm:$0xf] %v1207_v34  ;;  %v1217_v38 = vpack.c.bf16 %v926_v35, %v926_v35  ;;  %v920_v39 = vadd.f32 %v902_v19, %v875_v36  ;;  %v886_v40 = vadd.f32 %v1306_v37, %v1282_v16 }
 0x22b   : > { %v877_v41 = vpop.f32.mrf.mxu1 }
 0x22c   : > { %1023 = vst [vmem:[%s1753_s12 + $0x50] sm:$0xf] %v1217_v38  ;;  %v1213_v42 = vpack.c.bf16 %v920_v39, %v920_v39  ;;  %v929_v43 = vadd.f32 %v902_v19, %v886_v40  ;;  %v878_v44 = vadd.f32 %v877_v41, %v611_v18 }
 0x22e   : > { %1019 = vst [vmem:[%s1753_s12 + $0x38] sm:$0xf] %v1213_v42  ;;  %v1219_v45 = vpack.c.bf16 %v929_v43, %v929_v43  ;;  %v923_v46 = vadd.f32 %v902_v19, %v878_v44 }
 0x230   : > { %1025 = vst [vmem:[%s1753_s12 + $0x5c] sm:$0xf] %v1219_v45  ;;  %v1215_v47 = vpack.c.bf16 %v923_v46, %v923_v46 }
 0x232   : > { %1021 = vst [vmem:[%s1753_s12 + $0x44] sm:$0xf] %v1215_v47 }
 0x233   : > { %1487 = shalt.err (!%p1484_p3)
}
 0x234   : > { %s1488_s30 = scalar_lea.hbm %s1790_s17, 1536  ;;  %s1492_s9 = scalar_lea.hbm %s1843_s5, 3072 }
 0x235   : > { %p1489_p2 = scmp.ne.s32.totalorder %s1790_s17, %s1488_s30  ;;  %p1493_p7 = scmp.lt.s32.totalorder %s1790_s17, %s1843_s5 }
 0x236   : > { %p1494_p6 = scmp.lt.s32.totalorder %s1492_s9, %s1488_s30 }
 0x237   : > { %p1490_p4 = pnand %p1489_p2, %p1620_p5 }
 0x238   : > { %p1495_p9 = por %p1494_p6, %p1493_p7 }
 0x239   : > { %p1491_p13 = pneg %p1490_p4 }
 0x23b   : > { %p1496_p10 = pnand %p1495_p9, %p1491_p13 }
 0x23d   : > { %1499 = shalt.err (!%p1496_p10)
}
 0x23e   : > { %s1550_s12 = smov 192   ;;  %s1551_s13 = smov 12  }
 0x23f   : > { %1318 = dma.vmem_to_hbm [thread:$0]  (%p1620_p5), %s1792_s14, 1536, %s1790_s17, %s1798_s22, %s1550_s12, %s1550_s12, %s1551_s13  }
 0x240 PF: > { %p1335_p12 = scmp.ge.s32.totalorder %s1542_s21, 2  ;;  %s1056_s15 = sand.u32 1, %s1530_s18  }
 0x241   : > { %p1853_p8 = scmp.ne.s32.totalorder %s1846_s29, 0  ;;  %s1057_s16 = scalar_lea.sflag [#allocation4], %s1056_s15 }
 0x243   : > { %p1328_p11 = pnand %p1335_p12, %p1853_p8 }
 0x245   : > { %p1329_p0 = pneg %p1328_p11 }
 0x247   : > { %1525 = dma.done.wait (%p1329_p0), %s1057_s16, 1536  }
 0x248   : > { %1527 = vsyncadd (%p1329_p0), %s1057_s16, 4294965760  ;;  %p17_p1 = scmp.ge.s32.totalorder %s1607_s24, 4   ;;  %s1854_s18 = smov %s1534_s19 }
 0x249   : > { %s1855_s19 = smov %s1538_s20  ;;  %s1856_s20 = smov %s1618_s27 }
 0x24a   : > { %s1857_s21 = smov %s1607_s24  ;;  %19 = sbr.rel (!%p17_p1) target bundleno = 5 (0x5), region = 84 }
 0x24f   :  { %1062 = vsyncpa [#allocation3], 1 }
 0x250   :  { %1064 = vsyncpa [#allocation3 + $0x1], 1 }
 0x251   :  { %1065 = vsyncpa [#allocation6], 1 }
 0x252   :  { %1066 = vsyncpa [#allocation4], 1 }
 0x253   :  { %1068 = vsyncpa [#allocation4 + $0x1], 1 }

</bundles_post_ra>
